<compile_context>
chip_gen: v6e
topology: v6e:2x2x1
jax: 0.10.0
libtpu: 0.0.40
codegen_flags: <defaults>
</compile_context>

<pallas_src>
import jax
import jax.numpy as jnp
from jax.experimental import pallas as pl
from jax.experimental.pallas import tpu as pltpu


def _identity_kernel(x_ref, o_ref):
    # Empty nn.Sequential applies no ops: pure pass-through of the tile.
    o_ref[...] = x_ref[...]


# Lane width preference: widest dense lane dim (multiple of 128) that divides
# the total element count. 512 keeps per-block bytes modest on v7x while
# staying wide enough to saturate the single vst slot on v5e.
_LANE_CANDIDATES = (512, 256, 128)
_MAX_BLOCK_ROWS = 1024
_ROW_CANDIDATES = (1024, 512, 256, 128, 64, 32, 16, 8)


def _pick_lane(total):
    for lane in _LANE_CANDIDATES:
        if total % lane == 0:
            return lane
    return None


def _pick_block_rows(rows):
    if rows <= _MAX_BLOCK_ROWS:
        return rows  # single block, full row extent (always a legal block shape)
    for cand in _ROW_CANDIDATES:
        if rows % cand == 0:
            return cand  # multiple of 8 -> legal sublane tiling, >=2 grid blocks
    return rows  # ragged fallback: single full-extent block


def _identity_copy_2d(x2d, block_rows, lane):
    rows = x2d.shape[0]
    grid = (rows // block_rows,)
    return pl.pallas_call(
        _identity_kernel,
        out_shape=jax.ShapeDtypeStruct(x2d.shape, x2d.dtype),
        grid=grid,
        in_specs=[pl.BlockSpec((block_rows, lane), lambda i: (i, 0))],
        out_specs=pl.BlockSpec((block_rows, lane), lambda i: (i, 0)),
        input_output_aliases={0: 0},  # output aliases input: no extra HBM buffer
        compiler_params=pltpu.CompilerParams(
            dimension_semantics=("parallel",),
        ),
    )(x2d)


@jax.jit
def discriminator_forward(x):
    """Identity forward of the (empty) Discriminator via a Pallas kernel.

    Args:
      x: array of any shape/dtype (PyTorch module applies no ops).
    Returns:
      array identical to `x` (same shape, dtype, values).
    """
    orig_shape = x.shape
    total = x.size

    lane = _pick_lane(total)
    if lane is None:
        # Element count not divisible by 128: single full-extent block
        # (block shape == full array dims is always legal).
        x2d = x.reshape(1, total)
        out2d = _identity_copy_2d(x2d, 1, total)
        return out2d.reshape(orig_shape)

    rows = total // lane
    block_rows = _pick_block_rows(rows)
    x2d = x.reshape(rows, lane)  # lane-dense 2D view of the flattened tensor
    out2d = _identity_copy_2d(x2d, block_rows, lane)
    return out2d.reshape(orig_shape)


if __name__ == "__main__":
    key = jax.random.PRNGKey(0)
    # Small NCHW input consistent with a GAN discriminator input.
    x = jax.random.normal(key, (2, 4, 16, 16), dtype=jnp.float32)

    y = discriminator_forward(x)
    y = jax.block_until_ready(y)

    # Sanity check: identity semantics.
    assert y.shape == x.shape and y.dtype == x.dtype
    assert bool(jnp.array_equal(y, x))

    print("KERNEL_OK")
</pallas_src>

<mosaic_0001>
module attributes {stable_mosaic.version = 11 : i64} {
  func.func @_identity_kernel(%arg0: i32, %arg1: memref<4x512xf32, #tpu.memory_space<vmem>>, %arg2: memref<4x512xf32, #tpu.memory_space<vmem>>) attributes {dimension_semantics = [#tpu.dimension_semantics<parallel>], iteration_bounds = array<i64: 1>, scalar_prefetch = 0 : i64, scratch_operands = 0 : i64, tpu.core_type = #tpu.core_type<tc>, window_params = [{transform_indices = @transform_0, window_bounds = array<i64: 4, 512>}, {transform_indices = @transform_1, window_bounds = array<i64: 4, 512>}]} {
    %c0 = arith.constant 0 : index
    %c0_0 = arith.constant 0 : index
    %0 = vector.load %arg1[%c0, %c0_0] : memref<4x512xf32, #tpu.memory_space<vmem>>, vector<4x512xf32>
    %c0_1 = arith.constant 0 : index
    %c0_2 = arith.constant 0 : index
    %1 = vector.load %arg2[%c0_1, %c0_2] : memref<4x512xf32, #tpu.memory_space<vmem>>, vector<4x512xf32>
    tpu.vector_store %arg2[%c0_1, %c0_2], %0 {strides = array<i32>} : memref<4x512xf32, #tpu.memory_space<vmem>>, vector<4x512xf32>,
    return
  }
  func.func @transform_0(%arg0: i32) -> (i32, i32) {
    %c0_i32 = arith.constant 0 : i32
    %c0_i32_0 = arith.constant 0 : i32
    return %arg0, %c0_i32 : i32, i32
  }
  func.func @transform_1(%arg0: i32) -> (i32, i32) {
    %c0_i32 = arith.constant 0 : i32
    %c0_i32_0 = arith.constant 0 : i32
    return %arg0, %c0_i32 : i32, i32
  }
}

</mosaic_0001>

<bundles_post_ra>
// kernel: discriminator_forward.1
= control target key start
LH: loop header
LB: loop body
LE: loop exit
PB: predicated region body
PF: predicated region fallthrough
CT: control target
= control target key end

     0   :  { %s38_s0 = inlined_call_operand.vmem [shape: f32[4,512], index: 0, kind: input, shape index: {}, may-alias: {0,1}]   ;;  %s39_s1 = inlined_call_operand.vmem [shape: f32[4,512], index: 1, kind: output, shape index: {}, may-alias: {0,1}]  }
   0x1   :  { %v8_v0 = vld [vmem:[%s38_s0] sm:$0xff]  ;;  %v9_v1 = vld [vmem:[%s38_s0 + $0x8] sm:$0xff] }
   0x2   :  { %10 = vst [vmem:[%s39_s1] sm:$0xff] %v8_v0  ;;  %11 = vst [vmem:[%s39_s1 + $0x8] sm:$0xff] %v9_v1 }

</bundles_post_ra>
